<compile_context>
chip_gen: v7x
topology: tpu7x:2x2x1
jax: 0.10.0
libtpu: 0.0.40
codegen_flags: <defaults>
</compile_context>

<pallas_src>
import jax
import jax.numpy as jnp
from jax.experimental import pallas as pl
from jax.experimental.pallas import tpu as pltpu

NEG_SLOPE = 0.01                      # nn.LeakyReLU default
VMEM_LIMIT_BYTES = 48 * 1024 * 1024   # explicit; leaves headroom on v7x (64 MiB)


def _leaky_relu(x):
    return jnp.where(x >= 0, x, NEG_SLOPE * x)


def _round_up(x, m):
    return ((x + m - 1) // m) * m


# ---------------------------------------------------------------------------
# Kernels
# ---------------------------------------------------------------------------
def gnn_layer_kernel(a_ref, inv_ref, h_ref, wg_ref, out_ref):
    """One GraphSAGE layer for a slab of TILE_R node rows.

    a_ref  : (TILE_R, N_pad) bf16  rows of (A_bin + I); values 0/1/2, exact
    inv_ref: (TILE_R, 1)     f32   1 / (deg + 1) per row
    h_ref  : (N_pad, D_pad)  f32   full previous-layer features (resident)
    wg_ref : (D_pad, D_pad)  f32   W_l^T, zero-padded
    out_ref: (TILE_R, D_pad) f32
    """
    agg = jnp.dot(a_ref[...].astype(jnp.float32), h_ref[...],
                  preferred_element_type=jnp.float32) * inv_ref[...]
    out_ref[...] = _leaky_relu(
        jnp.dot(agg, wg_ref[...], preferred_element_type=jnp.float32))


def gnn_mlp_kernel(a_ref, inv_ref, h_ref, wg_ref, w1_ref, b1_ref,
                   w2_ref, b2_ref, out_ref):
    """Last GraphSAGE layer fused with the MLP head, for one row slab."""
    agg = jnp.dot(a_ref[...].astype(jnp.float32), h_ref[...],
                  preferred_element_type=jnp.float32) * inv_ref[...]
    h = _leaky_relu(
        jnp.dot(agg, wg_ref[...], preferred_element_type=jnp.float32))
    y = _leaky_relu(
        jnp.dot(h, w1_ref[...], preferred_element_type=jnp.float32)
        + b1_ref[...])
    y = _leaky_relu(
        jnp.dot(y, w2_ref[...], preferred_element_type=jnp.float32)
        + b2_ref[...])
    out_ref[...] = y


# ---------------------------------------------------------------------------
# One-time preprocessing (graph structure + weights are reused across calls)
# ---------------------------------------------------------------------------
def prepare_grafin_params(A, gnn_weights, w1, b1, w2, b2):
    """Binarize/fold/pad everything once, outside the hot forward path."""
    N = int(A.shape[0])
    gnn_num = int(gnn_weights.shape[0])
    D = int(gnn_weights.shape[1])
    hidden = int(w1.shape[0])
    out_dim = int(w2.shape[0])

    N_pad = _round_up(N, 128)
    D_pad = _round_up(D, 128)
    H_pad = _round_up(hidden, 128)
    O_pad = _round_up(out_dim, 128)

    # Graph: nonzero == edge.  Fold the "+ h[i]" self-term into (A_bin + I);
    # then deg + 1 == rowsum(A_bin + I), precompute its reciprocal once.
    a_bin = (A != 0).astype(jnp.float32)
    a_plus = a_bin + jnp.eye(N, dtype=jnp.float32)
    inv = 1.0 / jnp.sum(a_plus, axis=1, keepdims=True)            # >= 1/(N+1)

    a_plus_p = jnp.zeros((N_pad, N_pad), jnp.bfloat16)
    a_plus_p = a_plus_p.at[:N, :N].set(a_plus.astype(jnp.bfloat16))  # exact
    inv_p = jnp.ones((N_pad, 1), jnp.float32).at[:N, :].set(inv)

    # GNN weights: torch layout (in, out); forward is h' = agg @ W^T.
    wg_p = []
    for l in range(gnn_num):
        w = jnp.zeros((D_pad, D_pad), jnp.float32)
        wg_p.append(w.at[:D, :D].set(gnn_weights[l].T.astype(jnp.float32)))

    w1_p = jnp.zeros((D_pad, H_pad), jnp.float32).at[:D, :hidden].set(
        w1.T.astype(jnp.float32))
    b1_p = jnp.zeros((1, H_pad), jnp.float32).at[:, :hidden].set(
        b1.reshape(1, -1).astype(jnp.float32))
    w2_p = jnp.zeros((H_pad, O_pad), jnp.float32).at[:hidden, :out_dim].set(
        w2.T.astype(jnp.float32))
    b2_p = jnp.zeros((1, O_pad), jnp.float32).at[:, :out_dim].set(
        b2.reshape(1, -1).astype(jnp.float32))

    return dict(
        a_plus=a_plus_p, inv=inv_p, wg=wg_p,
        w1=w1_p, b1=b1_p, w2=w2_p, b2=b2_p,
        N=N, N_pad=N_pad, D=D, D_pad=D_pad, H_pad=H_pad, O_pad=O_pad,
        out_dim=out_dim, gnn_num=gnn_num,
    )


# ---------------------------------------------------------------------------
# Forward
# ---------------------------------------------------------------------------
def grafin_forward(params, features):
    N, N_pad = params["N"], params["N_pad"]
    D, D_pad = params["D"], params["D_pad"]
    H_pad, O_pad = params["H_pad"], params["O_pad"]
    gnn_num = params["gnn_num"]
    assert gnn_num >= 1, "GraFinModel with zero GNN layers is not supported"

    # Zero-pad features once; padded rows/cols stay exactly zero through every
    # layer (zero A rows, zero weight padding), so they never leak into valid
    # outputs.
    h = jnp.zeros((N_pad, D_pad), jnp.float32).at[:N, :D].set(
        features.astype(jnp.float32))

    # Row-slab tile: big enough to amortize per-grid-step overhead, small
    # enough that double-buffered bf16 A slabs (2 x TILE_R x N_pad x 2B) stay
    # well inside v7x's 64 MiB VMEM even for N ~ 16k.  N_pad is a multiple of
    # 128, so the chosen tile always divides it exactly.
    tile_r = 256 if N_pad % 256 == 0 else 128
    grid = (N_pad // tile_r,)

    a_spec = pl.BlockSpec((tile_r, N_pad), lambda i: (i, 0))     # streamed
    inv_spec = pl.BlockSpec((tile_r, 1), lambda i: (i, 0))       # streamed
    h_spec = pl.BlockSpec((N_pad, D_pad), lambda i: (0, 0))      # resident
    wg_spec = pl.BlockSpec((D_pad, D_pad), lambda i: (0, 0))     # resident

    cparams = pltpu.CompilerParams(
        dimension_semantics=("parallel",),       # row slabs are independent
        vmem_limit_bytes=VMEM_LIMIT_BYTES,
    )

    # Hidden GNN layers: one streamed pallas_call per layer (each row slab
    # needs the FULL previous-layer h, so layers cannot share a single grid).
    for l in range(gnn_num - 1):
        h = pl.pallas_call(
            gnn_layer_kernel,
            out_shape=jax.ShapeDtypeStruct((N_pad, D_pad), jnp.float32),
            grid=grid,
            in_specs=[a_spec, inv_spec, h_spec, wg_spec],
            out_specs=pl.BlockSpec((tile_r, D_pad), lambda i: (i, 0)),
            compiler_params=cparams,
        )(params["a_plus"], params["inv"], h, params["wg"][l])

    # Last GNN layer fused with the MLP head (lane-dense padded output).
    out_p = pl.pallas_call(
        gnn_mlp_kernel,
        out_shape=jax.ShapeDtypeStruct((N_pad, O_pad), jnp.float32),
        grid=grid,
        in_specs=[a_spec, inv_spec, h_spec, wg_spec,
                  pl.BlockSpec((D_pad, H_pad), lambda i: (0, 0)),
                  pl.BlockSpec((1, H_pad), lambda i: (0, 0)),
                  pl.BlockSpec((H_pad, O_pad), lambda i: (0, 0)),
                  pl.BlockSpec((1, O_pad), lambda i: (0, 0))],
        out_specs=pl.BlockSpec((tile_r, O_pad), lambda i: (i, 0)),
        compiler_params=cparams,
    )(params["a_plus"], params["inv"], h, params["wg"][gnn_num - 1],
      params["w1"], params["b1"], params["w2"], params["b2"])

    return out_p[:N, :params["out_dim"]]


# ---------------------------------------------------------------------------
# Pure-JAX reference mirroring the PyTorch forward (float32)
# ---------------------------------------------------------------------------
def grafin_reference(A, features, gnn_weights, w1, b1, w2, b2):
    h = features.astype(jnp.float32)
    a_bin = (A != 0).astype(jnp.float32)
    deg = jnp.sum(a_bin, axis=1, keepdims=True)
    for l in range(gnn_weights.shape[0]):
        agg = (a_bin @ h + h) / (deg + 1.0)
        h = jax.nn.leaky_relu(agg @ gnn_weights[l].T, NEG_SLOPE)
    y = jax.nn.leaky_relu(h @ w1.T + b1, NEG_SLOPE)
    return jax.nn.leaky_relu(y @ w2.T + b2, NEG_SLOPE)


if __name__ == "__main__":
    key = jax.random.PRNGKey(0)
    N, D = 8, 32            # num nodes, landmark_num
    gnn_num = 2
    hidden, out_dim = 400, 70

    ks = jax.random.split(key, 8)

    # Adjacency with ~50% zeros (nonzero entries mark edges, values arbitrary).
    edge_mask = jax.random.uniform(ks[0], (N, N)) > 0.5
    A = jnp.where(edge_mask, jax.random.normal(ks[1], (N, N)), 0.0)
    A = A.astype(jnp.float32)

    features = jax.random.normal(ks[2], (N, D), dtype=jnp.float32)

    # GraphSAGE weights: torch.randn(input_dim, output_dim) per layer.
    gnn_w = jax.random.normal(ks[3], (gnn_num, D, D), dtype=jnp.float32)

    # nn.Linear default init: U(-1/sqrt(fan_in), 1/sqrt(fan_in)).
    lim1 = 1.0 / (D ** 0.5)
    w1 = jax.random.uniform(ks[4], (hidden, D), minval=-lim1, maxval=lim1,
                            dtype=jnp.float32)
    b1 = jax.random.uniform(ks[5], (hidden,), minval=-lim1, maxval=lim1,
                            dtype=jnp.float32)
    lim2 = 1.0 / (hidden ** 0.5)
    w2 = jax.random.uniform(ks[6], (out_dim, hidden), minval=-lim2, maxval=lim2,
                            dtype=jnp.float32)
    b2 = jax.random.uniform(ks[7], (out_dim,), minval=-lim2, maxval=lim2,
                            dtype=jnp.float32)

    # One-time prep (graph + weights), then the streamed forward.
    params = prepare_grafin_params(A, gnn_w, w1, b1, w2, b2)
    out = grafin_forward(params, features)
    out = jax.block_until_ready(out)

    ref = grafin_reference(A, features, gnn_w, w1, b1, w2, b2)
    assert out.shape == (N, out_dim), out.shape
    assert jnp.allclose(out, ref, atol=1e-4, rtol=1e-4), \
        float(jnp.max(jnp.abs(out - ref)))

    print("KERNEL_OK")
</pallas_src>

<mosaic_0001>
module attributes {stable_mosaic.version = 11 : i64} {
  func.func @gnn_layer_kernel(%arg0: i32, %arg1: memref<128x128xbf16, #tpu.memory_space<vmem>>, %arg2: memref<128x1xf32, #tpu.memory_space<vmem>>, %arg3: memref<128x128xf32, #tpu.memory_space<vmem>>, %arg4: memref<128x128xf32, #tpu.memory_space<vmem>>, %arg5: memref<128x128xf32, #tpu.memory_space<vmem>>) attributes {dimension_semantics = [#tpu.dimension_semantics<parallel>], iteration_bounds = array<i64: 1>, scalar_prefetch = 0 : i64, scratch_operands = 0 : i64, tpu.core_type = #tpu.core_type<tc>, window_params = [{transform_indices = @transform_0, window_bounds = array<i64: 128, 128>}, {transform_indices = @transform_1, window_bounds = array<i64: 128, 1>}, {pipeline_mode = #tpu.pipeline_mode<synchronous>, transform_indices = @transform_2, window_bounds = array<i64: 128, 128>}, {pipeline_mode = #tpu.pipeline_mode<synchronous>, transform_indices = @transform_3, window_bounds = array<i64: 128, 128>}, {transform_indices = @transform_4, window_bounds = array<i64: 128, 128>}]} {
    %c0 = arith.constant 0 : index
    %c0_0 = arith.constant 0 : index
    %0 = vector.load %arg1[%c0, %c0_0] : memref<128x128xbf16, #tpu.memory_space<vmem>>, vector<128x128xbf16>
    %1 = arith.extf %0 : vector<128x128xbf16> to vector<128x128xf32>
    %c0_1 = arith.constant 0 : index
    %c0_2 = arith.constant 0 : index
    %2 = vector.load %arg3[%c0_1, %c0_2] : memref<128x128xf32, #tpu.memory_space<vmem>>, vector<128x128xf32>
    %cst = arith.constant dense<0.000000e+00> : vector<128x128xf32>
    %3 = tpu.matmul %1, %2, %cst {dimension_numbers = #tpu.dot_dimension_numbers<[1], [0], [0], [1], [0, 0, 1, 1], [], []>} : vector<128x128xf32>, vector<128x128xf32>, vector<128x128xf32> -> vector<128x128xf32>
    %c0_3 = arith.constant 0 : index
    %c0_4 = arith.constant 0 : index
    %4 = vector.load %arg2[%c0_3, %c0_4] : memref<128x1xf32, #tpu.memory_space<vmem>>, vector<128x1xf32>
    %5 = vector.broadcast %4 : vector<128x1xf32> to vector<128x128xf32>
    %6 = arith.mulf %3, %5 : vector<128x128xf32>
    %c0_5 = arith.constant 0 : index
    %c0_6 = arith.constant 0 : index
    %7 = vector.load %arg4[%c0_5, %c0_6] : memref<128x128xf32, #tpu.memory_space<vmem>>, vector<128x128xf32>
    %cst_7 = arith.constant dense<0.000000e+00> : vector<128x128xf32>
    %8 = tpu.matmul %6, %7, %cst_7 {dimension_numbers = #tpu.dot_dimension_numbers<[1], [0], [0], [1], [0, 0, 1, 1], [], []>} : vector<128x128xf32>, vector<128x128xf32>, vector<128x128xf32> -> vector<128x128xf32>
    %cst_8 = arith.constant 0.000000e+00 : f32
    %9 = vector.broadcast %cst_8 : f32 to vector<128x128xf32>
    %10 = arith.cmpf oge, %8, %9 : vector<128x128xf32>
    %cst_9 = arith.constant 0.00999999977 : f32
    %11 = vector.broadcast %cst_9 : f32 to vector<128x128xf32>
    %12 = arith.mulf %11, %8 : vector<128x128xf32>
    %13 = arith.select %10, %8, %12 : vector<128x128xi1>, vector<128x128xf32>
    %c0_10 = arith.constant 0 : index
    %c0_11 = arith.constant 0 : index
    %14 = vector.load %arg5[%c0_10, %c0_11] : memref<128x128xf32, #tpu.memory_space<vmem>>, vector<128x128xf32>
    tpu.vector_store %arg5[%c0_10, %c0_11], %13 {strides = array<i32>} : memref<128x128xf32, #tpu.memory_space<vmem>>, vector<128x128xf32>,
    return
  }
  func.func @transform_0(%arg0: i32) -> (i32, i32) {
    %c0_i32 = arith.constant 0 : i32
    %c0_i32_0 = arith.constant 0 : i32
    return %arg0, %c0_i32 : i32, i32
  }
  func.func @transform_1(%arg0: i32) -> (i32, i32) {
    %c0_i32 = arith.constant 0 : i32
    %c0_i32_0 = arith.constant 0 : i32
    return %arg0, %c0_i32 : i32, i32
  }
  func.func @transform_2(%arg0: i32) -> (i32, i32) {
    %c0_i32 = arith.constant 0 : i32
    %c0_i32_0 = arith.constant 0 : i32
    %c0_i32_1 = arith.constant 0 : i32
    return %c0_i32, %c0_i32_0 : i32, i32
  }
  func.func @transform_3(%arg0: i32) -> (i32, i32) {
    %c0_i32 = arith.constant 0 : i32
    %c0_i32_0 = arith.constant 0 : i32
    %c0_i32_1 = arith.constant 0 : i32
    return %c0_i32, %c0_i32_0 : i32, i32
  }
  func.func @transform_4(%arg0: i32) -> (i32, i32) {
    %c0_i32 = arith.constant 0 : i32
    %c0_i32_0 = arith.constant 0 : i32
    return %arg0, %c0_i32 : i32, i32
  }
}

</mosaic_0001>

<bundles_post_ra>
// kernel: tpu_custom_call.1
= control target key start
LH: loop header
LB: loop body
LE: loop exit
PB: predicated region body
PF: predicated region fallthrough
CT: control target
= control target key end

     0   :  { %9 = vsyncpa [#allocation3], 0  ;;  %s1130_s0 = inlined_call_operand.hbm [shape: bf16[128,128], index: 0, kind: input, shape index: {}]   ;;  %s1131_s1 = inlined_call_operand.vmem [shape: f32[128,1], index: 1, kind: input, shape index: {}]   ;;  %s1132_s2 = inlined_call_operand.vmem [shape: f32[128,128], index: 2, kind: input, shape index: {}]   ;;  %s1133_s3 = inlined_call_operand.hbm [shape: f32[128,128], index: 3, kind: input, shape index: {}]   ;;  %s1134_s4 = inlined_call_operand.hbm [shape: f32[128,128], index: 4, kind: output, shape index: {}]  }
   0x1   :  { %10 = vsyncpa [#allocation6], 0 }
   0x2   :  { %11 = vsyncpa [#allocation4], 0  ;;  %s955_s15 = smov [#allocation2]   ;;  %s883_s19 = scalar_lea.hbm %s1130_s0, 1024 }
   0x3   :  { %s17_s16 = sshll.u32 %s955_s15, 4  ;;  %p884_p0 = scmp.ne.s32.totalorder %s1130_s0, %s883_s19  ;;  %s18_s16 = int_to_ptr.vmem [resolvable:$true] %s17_s16 }
   0x4   :  { %p887_p1 = scmp.lt.u32.totalorder %s883_s19, %s1130_s0 }
   0x6   :  { %p889_p2 = pnand %p887_p1, %p884_p0 }
   0x8   :  { %892 = shalt.err (!%p889_p2)
}
   0x9   :  { %s893_s24 = scalar_lea.vmem %s18_s16, 1024  ;;  %p898_p4 = scmp.lt.s32.totalorder %s18_s16, %s18_s16 }
   0xa   :  { %p894_p3 = scmp.ne.s32.totalorder %s18_s16, %s893_s24  ;;  %p899_p5 = scmp.lt.s32.totalorder %s893_s24, %s893_s24 }
   0xc   :  { %p900_p6 = por %p899_p5, %p898_p4 }
   0xe   :  { %p901_p7 = pnand %p900_p6, %p894_p3 }
  0x10   :  { %904 = shalt.err (!%p901_p7)
}
  0x11   :  { %s956_s25 = smov 64   ;;  %s957_s26 = smov 4  }
  0x12   :  { %23 = dma.hbm_to_vmem [thread:$0]  %s1130_s0, 1024, %s18_s16, [#allocation3], %s956_s25, %s956_s25, %s957_s26  }
  0x13   :  { %s958_s29 = smov [#allocation5]   ;;  %s905_s7 = scalar_lea.hbm %s1133_s3, 2048 }
  0x14   :  { %s33_s30 = sshll.u32 %s958_s29, 4  ;;  %p906_p8 = scmp.ne.s32.totalorder %s1133_s3, %s905_s7  ;;  %s34_s30 = int_to_ptr.vmem [resolvable:$true] %s33_s30 }
  0x15   :  { %p909_p9 = scmp.lt.u32.totalorder %s905_s7, %s1133_s3 }
  0x17   :  { %p911_p10 = pnand %p909_p9, %p906_p8 }
  0x19   :  { %914 = shalt.err (!%p911_p10)
}
  0x1a   :  { %s915_s12 = scalar_lea.vmem %s34_s30, 2048  ;;  %p920_p12 = scmp.lt.s32.totalorder %s34_s30, %s34_s30 }
  0x1b   :  { %p916_p11 = scmp.ne.s32.totalorder %s34_s30, %s915_s12  ;;  %p921_p13 = scmp.lt.s32.totalorder %s915_s12, %s915_s12 }
  0x1d   :  { %p922_p0 = por %p921_p13, %p920_p12 }
  0x1f   :  { %p923_p1 = pnand %p922_p0, %p916_p11 }
  0x21   :  { %926 = shalt.err (!%p923_p1)
}
  0x22   :  { %s959_s0 = smov 128   ;;  %s960_s13 = smov 8  }
  0x23   :  { %39 = dma.hbm_to_vmem [thread:$0]  %s1133_s3, 2048, %s34_s30, [#allocation6], %s959_s0, %s959_s0, %s960_s13  }
  0x24   :  { %949 = dma.done.wait [#allocation3], 1024  }
  0x25   :  { %950 = vsyncadd [#allocation3], 4294966272 }
  0x26   :  { %951 = dma.done.wait [#allocation6], 2048  }
  0x27   :  { %952 = vsyncadd [#allocation6], 4294965248  ;;  %v961_v0 = vmov 0   ;;  %v78_v1 = vld [vmem:[%s1132_s2] sm:$0xff]  ;;  %v79_v2 = vld [vmem:[%s1132_s2 + $0x8] sm:$0xff] }
  0x28   :  { %881 = vset.pattern.permute.xlu0 %v961_v0  ;;  %882 = vset.pattern.permute.xlu1 %v961_v0  ;;  %v80_v3 = vld [vmem:[%s1132_s2 + $0x10] sm:$0xff]  ;;  %v809_v4 = vpack.c.bf16 %v79_v2, %v78_v1  ;;  %v81_v5 = vld [vmem:[%s1132_s2 + $0x18] sm:$0xff]  ;;  %v82_v7 = vld [vmem:[%s1132_s2 + $0x20] sm:$0xff] }
  0x29   :  { %v813_v6 = vpack.c.bf16 %v81_v5, %v80_v3  ;;  %v83_v8 = vld [vmem:[%s1132_s2 + $0x28] sm:$0xff]  ;;  %v1033_v10 = vld [vmem:[#allocation2] sm:$0xff]   ;;  %v84_v11 = vld [vmem:[%s1132_s2 + $0x30] sm:$0xff] }
  0x2a   :  { %810 = vmatprep.subr.bf16.mxu0 %v809_v4  ;;  %v817_v9 = vpack.c.bf16 %v83_v8, %v82_v7  ;;  %v85_v12 = vld [vmem:[%s1132_s2 + $0x38] sm:$0xff]  ;;  %v596_v13 = vunpack.c.l.bf16 %v1033_v10  ;;  %v239_v14 = vld [vmem:[%s1131_s1] sm:$0xff]  ;;  %v241_v15 = vld [vmem:[%s1131_s1 + $0x10] sm:$0xff]  ;;  %v597_v58 = vunpack.c.h.bf16 %v1033_v10 }
  0x2b   :  { %812 = vmatpush3.bf16.msra.mxu0 %v809_v4  ;;  %v821_v16 = vpack.c.bf16 %v85_v12, %v84_v11  ;;  %257 = vperm.xlu0 %881, %v239_v14   ;;  %v86_v17 = vld [vmem:[%s1132_s2 + $0x40] sm:$0xff]  ;;  %v87_v18 = vld [vmem:[%s1132_s2 + $0x48] sm:$0xff]  ;;  %v242_v20 = vld [vmem:[%s1131_s1 + $0x18] sm:$0xff] }
  0x2c   :  { %814 = vmatprep.subr.bf16.mxu0 %v813_v6  ;;  %729 = vmatprep.mubr.f32.mxu0 %v596_v13  ;;  %v240_v19 = vld [vmem:[%s1131_s1 + $0x8] sm:$0xff]  ;;  %v88_v21 = vld [vmem:[%s1132_s2 + $0x50] sm:$0xff]  ;;  %v825_v22 = vpack.c.bf16 %v87_v18, %v86_v17  ;;  %v89_v23 = vld [vmem:[%s1132_s2 + $0x58] sm:$0xff] }
  0x2d   :  { %267 = vperm.xlu1 %882, %v241_v15   ;;  %v351_v24 = vld [vmem:[#allocation5] sm:$0xff]  ;;  %v352_v25 = vld [vmem:[#allocation5 + $0x8] sm:$0xff]  ;;  %v353_v28 = vld [vmem:[#allocation5 + $0x10] sm:$0xff]  ;;  %v829_v34 = vpack.c.bf16 %v89_v23, %v88_v21 }
  0x2e   :  { %v243_v26 = vld [vmem:[%s1131_s1 + $0x20] sm:$0xff]  ;;  %v841_v27 = vpack.c.bf16 %v352_v25, %v351_v24  ;;  %v354_v29 = vld [vmem:[#allocation5 + $0x18] sm:$0xff]  ;;  %v244_v30 = vld [vmem:[%s1131_s1 + $0x28] sm:$0xff] }
  0x2f   :  { %816 = vmatpush3.bf16.msra.mxu0 %v813_v6  ;;  %262 = vperm.xlu0 %881, %v240_v19   ;;  %v845_v31 = vpack.c.bf16 %v354_v29, %v353_v28  ;;  %v355_v32 = vld [vmem:[#allocation5 + $0x20] sm:$0xff]  ;;  %v356_v33 = vld [vmem:[#allocation5 + $0x28] sm:$0xff]  ;;  %v245_v37 = vld [vmem:[%s1131_s1 + $0x30] sm:$0xff] }
  0x30   :  { %818 = vmatprep.subr.bf16.mxu0 %v817_v9  ;;  %842 = vmatprep.subr.bf16.mxu1 %v841_v27  ;;  %v90_v35 = vld [vmem:[%s1132_s2 + $0x60] sm:$0xff]  ;;  %v91_v36 = vld [vmem:[%s1132_s2 + $0x68] sm:$0xff]  ;;  %v246_v38 = vld [vmem:[%s1131_s1 + $0x38] sm:$0xff]  ;;  %v849_v39 = vpack.c.bf16 %v356_v33, %v355_v32 }
  0x31   :  { %272 = vperm.xlu1 %882, %v242_v20   ;;  %844 = vmatpush3.bf16.msra.mxu1 %v841_v27  ;;  %v357_v40 = vld [vmem:[#allocation5 + $0x30] sm:$0xff]  ;;  %v358_v41 = vld [vmem:[#allocation5 + $0x38] sm:$0xff]  ;;  %v833_v42 = vpack.c.bf16 %v91_v36, %v90_v35  ;;  %v247_v45 = vld [vmem:[%s1131_s1 + $0x40] sm:$0xff] }
  0x32   :  { %846 = vmatprep.subr.bf16.mxu1 %v845_v31  ;;  %v92_v43 = vld [vmem:[%s1132_s2 + $0x70] sm:$0xff]  ;;  %v93_v44 = vld [vmem:[%s1132_s2 + $0x78] sm:$0xff]  ;;  %v248_v46 = vld [vmem:[%s1131_s1 + $0x48] sm:$0xff]  ;;  %v853_v47 = vpack.c.bf16 %v358_v41, %v357_v40 }
  0x33   :  { %820 = vmatpush3.bf16.msra.mxu0 %v817_v9  ;;  %277 = vperm.xlu0 %881, %v243_v26   ;;  %v359_v48 = vld [vmem:[#allocation5 + $0x40] sm:$0xff]  ;;  %v360_v49 = vld [vmem:[#allocation5 + $0x48] sm:$0xff]  ;;  %v837_v50 = vpack.c.bf16 %v93_v44, %v92_v43  ;;  %v249_v51 = vld [vmem:[%s1131_s1 + $0x50] sm:$0xff] }
  0x34   :  { %822 = vmatprep.subr.bf16.mxu0 %v821_v16  ;;  %v250_v52 = vld [vmem:[%s1131_s1 + $0x58] sm:$0xff]  ;;  %v857_v53 = vpack.c.bf16 %v360_v49, %v359_v48  ;;  %v361_v54 = vld [vmem:[#allocation5 + $0x50] sm:$0xff]  ;;  %v626_v56 = vld [vmem:[#allocation2 + $0x8] sm:$0xff]  }
  0x35   :  { %282 = vperm.xlu1 %882, %v244_v30   ;;  %848 = vmatpush3.bf16.msra.mxu1 %v845_v31  ;;  %v362_v55 = vld [vmem:[#allocation5 + $0x58] sm:$0xff]  ;;  %v251_v57 = vld [vmem:[%s1131_s1 + $0x60] sm:$0xff]  ;;  %v252_v59 = vld [vmem:[%s1131_s1 + $0x68] sm:$0xff]  ;;  %v600_v61 = vunpack.c.l.bf16 %v626_v56  ;;  %v601_v2 = vunpack.c.h.bf16 %v626_v56 }
  0x36   :  { %850 = vmatprep.subr.bf16.mxu1 %v849_v39  ;;  %v861_v60 = vpack.c.bf16 %v362_v55, %v361_v54  ;;  %v363_v62 = vld [vmem:[#allocation5 + $0x60] sm:$0xff]  ;;  %v364_v63 = vld [vmem:[#allocation5 + $0x68] sm:$0xff]  ;;  %v627_v0 = vld [vmem:[#allocation2 + $0x10] sm:$0xff]  }
  0x37   :  { %824 = vmatpush3.bf16.msra.mxu0 %v821_v16  ;;  %287 = vperm.xlu0 %881, %v245_v37   ;;  %v253_v1 = vld [vmem:[%s1131_s1 + $0x70] sm:$0xff]  ;;  %v254_v3 = vld [vmem:[%s1131_s1 + $0x78] sm:$0xff]  ;;  %v865_v4 = vpack.c.bf16 %v364_v63, %v363_v62  ;;  %v604_v5 = vunpack.c.l.bf16 %v627_v0  ;;  %v605_v7 = vunpack.c.h.bf16 %v627_v0  ;;  %v629_v9 = vld [vmem:[#allocation2 + $0x20] sm:$0xff]   ;;  %s962_s1 = smov [#allocation7]  }
  0x38   :  { %826 = vmatprep.subr.bf16.mxu0 %v825_v22  ;;  %v628_v6 = vld [vmem:[#allocation2 + $0x18] sm:$0xff]   ;;  %v612_v11 = vunpack.c.l.bf16 %v629_v9  ;;  %v630_v12 = vld [vmem:[#allocation2 + $0x28] sm:$0xff]   ;;  %v613_v13 = vunpack.c.h.bf16 %v629_v9  ;;  %v631_v15 = vld [vmem:[#allocation2 + $0x30] sm:$0xff]   ;;  %s581_s26 = sshll.u32 %s962_s1, 4  ;;  %s582_s26 = int_to_ptr.vmem [resolvable:$true] %s581_s26 }
  0x39   :  { %292 = vperm.xlu1 %882, %v246_v38   ;;  %852 = vmatpush3.bf16.msra.mxu1 %v849_v39  ;;  %v608_v8 = vunpack.c.l.bf16 %v628_v6  ;;  %v609_v10 = vunpack.c.h.bf16 %v628_v6  ;;  %v616_v14 = vunpack.c.l.bf16 %v630_v12  ;;  %v617_v16 = vunpack.c.h.bf16 %v630_v12  ;;  %v632_v18 = vld [vmem:[#allocation2 + $0x38] sm:$0xff]   ;;  %s927_s27 = scalar_lea.vmem %s582_s26, 2048  ;;  %p932_p3 = scmp.lt.s32.totalorder %s582_s26, %s582_s26 }
  0x3a   :  { %854 = vmatprep.subr.bf16.mxu1 %v853_v47  ;;  %v620_v17 = vunpack.c.l.bf16 %v631_v15  ;;  %v621_v19 = vunpack.c.h.bf16 %v631_v15  ;;  %v624_v20 = vunpack.c.l.bf16 %v632_v18  ;;  %v625_v21 = vunpack.c.h.bf16 %v632_v18  ;;  %v366_v23 = vld [vmem:[#allocation5 + $0x78] sm:$0xff]  ;;  %p928_p2 = scmp.ne.s32.totalorder %s582_s26, %s927_s27  ;;  %p933_p4 = scmp.lt.s32.totalorder %s927_s27, %s927_s27 }
  0x3b   :  { %828 = vmatpush3.bf16.msra.mxu0 %v825_v22  ;;  %297 = vperm.xlu0 %881, %v247_v45   ;;  %v365_v22 = vld [vmem:[#allocation5 + $0x70] sm:$0xff] }
  0x3c   :  { %830 = vmatprep.subr.bf16.mxu0 %v829_v34  ;;  %v869_v24 = vpack.c.bf16 %v366_v23, %v365_v22  ;;  %p934_p5 = por %p933_p4, %p932_p3 }
  0x3d   :  { %302 = vperm.xlu1 %882, %v248_v46   ;;  %856 = vmatpush3.bf16.msra.mxu1 %v853_v47 }
  0x3e   :  { %858 = vmatprep.subr.bf16.mxu1 %v857_v53  ;;  %p935_p6 = pnand %p934_p5, %p928_p2 }
  0x3f   :  { %832 = vmatpush3.bf16.msra.mxu0 %v829_v34  ;;  %307 = vperm.xlu0 %881, %v249_v51  }
  0x40   :  { %834 = vmatprep.subr.bf16.mxu0 %v833_v42 }
  0x41   :  { %312 = vperm.xlu1 %882, %v250_v52   ;;  %860 = vmatpush3.bf16.msra.mxu1 %v857_v53 }
  0x42   :  { %862 = vmatprep.subr.bf16.mxu1 %v861_v60 }
  0x43   :  { %836 = vmatpush3.bf16.msra.mxu0 %v833_v42  ;;  %317 = vperm.xlu0 %881, %v251_v57  }
  0x44   :  { %838 = vmatprep.subr.bf16.mxu0 %v837_v50 }
  0x45   :  { %322 = vperm.xlu1 %882, %v252_v59   ;;  %864 = vmatpush3.bf16.msra.mxu1 %v861_v60 }
  0x46   :  { %866 = vmatprep.subr.bf16.mxu1 %v865_v4 }
  0x47   :  { %840 = vmatpush3.bf16.msra.mxu0 %v837_v50  ;;  %327 = vperm.xlu0 %881, %v253_v1  }
  0x49   :  { %332 = vperm.xlu1 %882, %v254_v3   ;;  %868 = vmatpush3.bf16.msra.mxu1 %v865_v4 }
  0x4a   :  { %730 = vmatmul.mubr.f32.vlgmr.msra.gmra.mrb[0].mxu0 %v597_v58  ;;  %870 = vmatprep.subr.bf16.mxu1 %v869_v24 }
  0x4b   :  { %732 = vmatprep.mubr.f32.mxu0 %v600_v61 }
  0x4d   :  { %872 = vmatpush3.bf16.msra.mxu1 %v869_v24 }
  0x4e   :  { %733 = vmatmul.mubr.f32.gmra.mrb[2].mxu0 %v601_v2 }
  0x4f   :  { %735 = vmatprep.mubr.f32.mxu0 %v604_v5 }
  0x52   :  { %736 = vmatmul.mubr.f32.gmra.mrb[4].mxu0 %v605_v7 }
  0x53   :  { %738 = vmatprep.mubr.f32.mxu0 %v608_v8 }
  0x56   :  { %739 = vmatmul.mubr.f32.gmra.mrb[6].mxu0 %v609_v10 }
  0x57   :  { %741 = vmatprep.mubr.f32.mxu0 %v612_v11 }
  0x5a   :  { %742 = vmatmul.mubr.f32.gmra.mrb[8].mxu0 %v613_v13 }
  0x5b   :  { %744 = vmatprep.mubr.f32.mxu0 %v616_v14 }
  0x5e   :  { %745 = vmatmul.mubr.f32.gmra.mrb[10].mxu0 %v617_v16 }
  0x5f   :  { %747 = vmatprep.mubr.f32.mxu0 %v620_v17 }
  0x62   :  { %748 = vmatmul.mubr.f32.gmra.mrb[12].mxu0 %v621_v19 }
  0x63   :  { %750 = vmatprep.mubr.f32.mxu0 %v624_v20 }
  0x66   :  { %751 = vmatmul.mubr.f32.gmra.mrb[14].mxu0 %v625_v21 }
  0xaa   :  { %v258_v25 = vpop.permute.xlu0 %257 }
  0xac   :  { %v268_v26 = vpop.permute.xlu1 %267 }
  0xae   :  { %v263_v27 = vpop.permute.xlu0 %262 }
  0xb0   :  { %v273_v28 = vpop.permute.xlu1 %272 }
  0xb2   :  { %v278_v29 = vpop.permute.xlu0 %277 }
  0xb4   :  { %v283_v30 = vpop.permute.xlu1 %282 }
  0xb6   :  { %v288_v36 = vpop.permute.xlu0 %287 }
  0xb8   :  { %v293_v38 = vpop.permute.xlu1 %292 }
  0xba   :  { %v298_v44 = vpop.permute.xlu0 %297 }
  0xbc   :  { %v303_v46 = vpop.permute.xlu1 %302 }
  0xbe   :  { %v308_v52 = vpop.permute.xlu0 %307 }
  0xc0   :  { %v313_v54 = vpop.permute.xlu1 %312 }
  0xc2   :  { %v318_v60 = vpop.permute.xlu0 %317 }
  0xc4   :  { %v323_v62 = vpop.permute.xlu1 %322 }
  0xc6   :  { %v328_v4 = vpop.permute.xlu0 %327 }
  0xc8   :  { %v333_v6 = vpop.permute.xlu1 %332 }
 0x11d   :  { %v731_v31 = vpop.f32.mrb[0].mxu0 }
 0x11e   :  { %v160_v32 = vpop.f32.mrb[1].mxu0  ;;  %v336_v34 = vmul.f32 %v731_v31, %v263_v27 }
 0x11f   :  { %v335_v33 = vmul.f32 %v258_v25, %v160_v32 }
 0x121   :  { %v734_v35 = vpop.f32.mrb[2].mxu0  ;;  %785 = vmatprep.mubr.f32.mxu1 %v335_v33 }
 0x122   :  { %v170_v37 = vpop.f32.mrb[3].mxu0  ;;  %786 = vmatmul.mubr.f32.vlgmr.msra.gmra.mrb[0].mxu1 %v336_v34  ;;  %v338_v40 = vmul.f32 %v734_v35, %v273_v28 }
 0x123   :  { %v337_v39 = vmul.f32 %v268_v26, %v170_v37 }
 0x125   :  { %v737_v41 = vpop.f32.mrb[4].mxu0  ;;  %788 = vmatprep.mubr.f32.mxu1 %v337_v39 }
 0x126   :  { %v180_v42 = vpop.f32.mrb[5].mxu0  ;;  %789 = vmatmul.mubr.f32.gmra.mrb[2].mxu1 %v338_v40  ;;  %v340_v45 = vmul.f32 %v737_v41, %v283_v30 }
 0x127   :  { %v339_v43 = vmul.f32 %v278_v29, %v180_v42 }
 0x129   :  { %v740_v47 = vpop.f32.mrb[6].mxu0  ;;  %791 = vmatprep.mubr.f32.mxu1 %v339_v43 }
 0x12a   :  { %v190_v48 = vpop.f32.mrb[7].mxu0  ;;  %792 = vmatmul.mubr.f32.gmra.mrb[4].mxu1 %v340_v45  ;;  %v342_v50 = vmul.f32 %v740_v47, %v293_v38 }
 0x12b   :  { %v341_v49 = vmul.f32 %v288_v36, %v190_v48 }
 0x12d   :  { %v743_v51 = vpop.f32.mrb[8].mxu0  ;;  %794 = vmatprep.mubr.f32.mxu1 %v341_v49 }
 0x12e   :  { %v200_v53 = vpop.f32.mrb[9].mxu0  ;;  %795 = vmatmul.mubr.f32.gmra.mrb[6].mxu1 %v342_v50  ;;  %v344_v56 = vmul.f32 %v743_v51, %v303_v46 }
 0x12f   :  { %v343_v55 = vmul.f32 %v298_v44, %v200_v53 }
 0x131   :  { %v746_v57 = vpop.f32.mrb[10].mxu0  ;;  %797 = vmatprep.mubr.f32.mxu1 %v343_v55 }
 0x132   :  { %v210_v58 = vpop.f32.mrb[11].mxu0  ;;  %798 = vmatmul.mubr.f32.gmra.mrb[8].mxu1 %v344_v56  ;;  %v346_v61 = vmul.f32 %v746_v57, %v313_v54 }
 0x133   :  { %v345_v59 = vmul.f32 %v308_v52, %v210_v58 }
 0x135   :  { %v749_v63 = vpop.f32.mrb[12].mxu0  ;;  %800 = vmatprep.mubr.f32.mxu1 %v345_v59 }
 0x136   :  { %v220_v0 = vpop.f32.mrb[13].mxu0  ;;  %801 = vmatmul.mubr.f32.gmra.mrb[10].mxu1 %v346_v61  ;;  %v348_v2 = vmul.f32 %v749_v63, %v323_v62 }
 0x137   :  { %v347_v1 = vmul.f32 %v318_v60, %v220_v0 }
 0x139   :  { %v752_v3 = vpop.f32.mrb[14].mxu0  ;;  %803 = vmatprep.mubr.f32.mxu1 %v347_v1 }
 0x13a   :  { %v230_v5 = vpop.f32.mrb[15].mxu0  ;;  %804 = vmatmul.mubr.f32.gmra.mrb[12].mxu1 %v348_v2  ;;  %v350_v8 = vmul.f32 %v752_v3, %v333_v6 }
 0x13b   :  { %v349_v7 = vmul.f32 %v328_v4, %v230_v5 }
 0x13d   :  { %806 = vmatprep.mubr.f32.mxu1 %v349_v7 }
 0x13e   :  { %807 = vmatmul.mubr.f32.gmra.mrb[14].mxu1 %v350_v8 }
 0x1f5   :  { %v787_v9 = vpop.f32.mrb[0].mxu1 }
 0x1f6   :  { %vm513_vm0 = vcmp.ge.f32.partialorder %v787_v9, 0.0  ;;  %v529_v10 = vmul.f32 0.01, %v787_v9  ;;  %v433_v11 = vpop.f32.mrb[1].mxu1 }
 0x1f7   :  { %vm512_vm1 = vcmp.ge.f32.partialorder %v433_v11, 0.0  ;;  %v528_v12 = vmul.f32 0.01, %v433_v11 }
 0x1f8   :  { %v545_v13 = vsel %vm513_vm0, %v787_v9, %v529_v10 }
 0x1f9   :  { %561 = vst [vmem:[#allocation7 + $0x8] sm:$0xff] %v545_v13  ;;  %v544_v14 = vsel %vm512_vm1, %v433_v11, %v528_v12  ;;  %v790_v15 = vpop.f32.mrb[2].mxu1 }
 0x1fa   :  { %560 = vst [vmem:[#allocation7] sm:$0xff] %v544_v14  ;;  %vm515_vm2 = vcmp.ge.f32.partialorder %v790_v15, 0.0  ;;  %v531_v16 = vmul.f32 0.01, %v790_v15  ;;  %v443_v17 = vpop.f32.mrb[3].mxu1 }
 0x1fb   :  { %vm514_vm3 = vcmp.ge.f32.partialorder %v443_v17, 0.0  ;;  %v530_v18 = vmul.f32 0.01, %v443_v17 }
 0x1fc   :  { %v547_v19 = vsel %vm515_vm2, %v790_v15, %v531_v16 }
 0x1fd   :  { %563 = vst [vmem:[#allocation7 + $0x18] sm:$0xff] %v547_v19  ;;  %v546_v20 = vsel %vm514_vm3, %v443_v17, %v530_v18  ;;  %v793_v21 = vpop.f32.mrb[4].mxu1 }
 0x1fe   :  { %562 = vst [vmem:[#allocation7 + $0x10] sm:$0xff] %v546_v20  ;;  %vm517_vm4 = vcmp.ge.f32.partialorder %v793_v21, 0.0  ;;  %v533_v22 = vmul.f32 0.01, %v793_v21  ;;  %v453_v23 = vpop.f32.mrb[5].mxu1 }
 0x1ff   :  { %vm516_vm5 = vcmp.ge.f32.partialorder %v453_v23, 0.0  ;;  %v532_v24 = vmul.f32 0.01, %v453_v23 }
 0x200   :  { %v549_v25 = vsel %vm517_vm4, %v793_v21, %v533_v22 }
 0x201   :  { %565 = vst [vmem:[#allocation7 + $0x28] sm:$0xff] %v549_v25  ;;  %v548_v26 = vsel %vm516_vm5, %v453_v23, %v532_v24  ;;  %v796_v27 = vpop.f32.mrb[6].mxu1 }
 0x202   :  { %564 = vst [vmem:[#allocation7 + $0x20] sm:$0xff] %v548_v26  ;;  %vm519_vm6 = vcmp.ge.f32.partialorder %v796_v27, 0.0  ;;  %v535_v28 = vmul.f32 0.01, %v796_v27  ;;  %v463_v29 = vpop.f32.mrb[7].mxu1 }
 0x203   :  { %vm518_vm7 = vcmp.ge.f32.partialorder %v463_v29, 0.0  ;;  %v534_v30 = vmul.f32 0.01, %v463_v29 }
 0x204   :  { %v551_v31 = vsel %vm519_vm6, %v796_v27, %v535_v28 }
 0x205   :  { %567 = vst [vmem:[#allocation7 + $0x38] sm:$0xff] %v551_v31  ;;  %v550_v32 = vsel %vm518_vm7, %v463_v29, %v534_v30  ;;  %v799_v33 = vpop.f32.mrb[8].mxu1 }
 0x206   :  { %566 = vst [vmem:[#allocation7 + $0x30] sm:$0xff] %v550_v32  ;;  %vm521_vm8 = vcmp.ge.f32.partialorder %v799_v33, 0.0  ;;  %v537_v34 = vmul.f32 0.01, %v799_v33  ;;  %v473_v35 = vpop.f32.mrb[9].mxu1 }
 0x207   :  { %vm520_vm9 = vcmp.ge.f32.partialorder %v473_v35, 0.0  ;;  %v536_v36 = vmul.f32 0.01, %v473_v35 }
 0x208   :  { %v553_v37 = vsel %vm521_vm8, %v799_v33, %v537_v34 }
 0x209   :  { %569 = vst [vmem:[#allocation7 + $0x48] sm:$0xff] %v553_v37  ;;  %v552_v38 = vsel %vm520_vm9, %v473_v35, %v536_v36  ;;  %v802_v39 = vpop.f32.mrb[10].mxu1 }
 0x20a   :  { %568 = vst [vmem:[#allocation7 + $0x40] sm:$0xff] %v552_v38  ;;  %vm523_vm10 = vcmp.ge.f32.partialorder %v802_v39, 0.0  ;;  %v539_v40 = vmul.f32 0.01, %v802_v39  ;;  %v483_v41 = vpop.f32.mrb[11].mxu1 }
 0x20b   :  { %vm522_vm11 = vcmp.ge.f32.partialorder %v483_v41, 0.0  ;;  %v538_v42 = vmul.f32 0.01, %v483_v41 }
 0x20c   :  { %v555_v43 = vsel %vm523_vm10, %v802_v39, %v539_v40 }
 0x20d   :  { %571 = vst [vmem:[#allocation7 + $0x58] sm:$0xff] %v555_v43  ;;  %v554_v44 = vsel %vm522_vm11, %v483_v41, %v538_v42  ;;  %v805_v45 = vpop.f32.mrb[12].mxu1 }
 0x20e   :  { %570 = vst [vmem:[#allocation7 + $0x50] sm:$0xff] %v554_v44  ;;  %vm525_vm12 = vcmp.ge.f32.partialorder %v805_v45, 0.0  ;;  %v541_v46 = vmul.f32 0.01, %v805_v45  ;;  %v493_v47 = vpop.f32.mrb[13].mxu1 }
 0x20f   :  { %vm524_vm13 = vcmp.ge.f32.partialorder %v493_v47, 0.0  ;;  %v540_v48 = vmul.f32 0.01, %v493_v47 }
 0x210   :  { %v557_v49 = vsel %vm525_vm12, %v805_v45, %v541_v46 }
 0x211   :  { %573 = vst [vmem:[#allocation7 + $0x68] sm:$0xff] %v557_v49  ;;  %v556_v50 = vsel %vm524_vm13, %v493_v47, %v540_v48  ;;  %v808_v51 = vpop.f32.mrb[14].mxu1 }
 0x212   :  { %572 = vst [vmem:[#allocation7 + $0x60] sm:$0xff] %v556_v50  ;;  %vm527_vm14 = vcmp.ge.f32.partialorder %v808_v51, 0.0  ;;  %v543_v52 = vmul.f32 0.01, %v808_v51  ;;  %v503_v53 = vpop.f32.mrb[15].mxu1 }
 0x213   :  { %vm526_vm15 = vcmp.ge.f32.partialorder %v503_v53, 0.0  ;;  %v542_v54 = vmul.f32 0.01, %v503_v53 }
 0x214   :  { %v559_v55 = vsel %vm527_vm14, %v808_v51, %v543_v52 }
 0x215   :  { %575 = vst [vmem:[#allocation7 + $0x78] sm:$0xff] %v559_v55  ;;  %v558_v56 = vsel %vm526_vm15, %v503_v53, %v542_v54 }
 0x216   :  { %574 = vst [vmem:[#allocation7 + $0x70] sm:$0xff] %v558_v56 }
 0x217   :  { %938 = shalt.err (!%p935_p6)
}
 0x218   :  { %s939_s30 = scalar_lea.hbm %s1134_s4, 2048 }
 0x219   :  { %p940_p7 = scmp.ne.s32.totalorder %s1134_s4, %s939_s30  ;;  %p943_p8 = scmp.lt.u32.totalorder %s939_s30, %s1134_s4 }
 0x21b   :  { %p945_p9 = pnand %p943_p8, %p940_p7 }
 0x21d   :  { %948 = shalt.err (!%p945_p9)
}
 0x21e   :  { %587 = dma.vmem_to_hbm [thread:$0]  %s582_s26, 2048, %s1134_s4, [#allocation4], %s959_s0, %s959_s0, %s960_s13  }
 0x21f   :  { %953 = dma.done.wait [#allocation4], 2048  }
 0x220   :  { %954 = vsyncadd [#allocation4], 4294965248 }
 0x221   :  { %591 = vsyncpa [#allocation3], 1 }
 0x222   :  { %592 = vsyncpa [#allocation6], 1 }
 0x223   :  { %593 = vsyncpa [#allocation4], 1 }

</bundles_post_ra>
